<compile_context>
chip_gen: v6e
topology: v6e:2x2x1
jax: 0.10.0
libtpu: 0.0.40
codegen_flags: <defaults>
</compile_context>

<pallas_src>
import jax
import jax.numpy as jnp
from jax.experimental import pallas as pl
from jax.experimental.pallas import tpu as pltpu

LANE = 128
SUBLANE = 8


def qnetwork_kernel(x_ref, w1_ref, b1_ref, a1_ref,
                    w2_ref, b2_ref, a2_ref,
                    w3_ref, b3_ref, o_ref):
    x = x_ref[...]
    a1 = a1_ref[0, 0]          # scalar reads from SMEM (free scalar slot)
    a2 = a2_ref[0, 0]

    # fc1 + PReLU (single shared alpha, nn.PReLU() default).
    h1 = jnp.dot(x, w1_ref[...], preferred_element_type=jnp.float32) + b1_ref[...]
    h1 = jnp.where(h1 > 0, h1, a1 * h1)   # keep where(): alpha is learned, may be > 1

    # fc2 + PReLU.
    h2 = jnp.dot(h1, w2_ref[...], preferred_element_type=jnp.float32) + b2_ref[...]
    h2 = jnp.where(h2 > 0, h2, a2 * h2)

    # fc3 (Q-values, no activation); output block is exactly (tb, action_size).
    o_ref[...] = (jnp.dot(h2, w3_ref[...], preferred_element_type=jnp.float32)
                  + b3_ref[...]).astype(o_ref.dtype)


def _round_up(x, m):
    return ((x + m - 1) // m) * m


def prepare_params(params):
    """One-time repack of PyTorch-shaped params for the kernel.

    Weights become (in, out) with the hidden dim zero-padded to the 128-lane
    width (numerically exact: padded rows/cols are zero).  The final layer
    keeps exactly action_size output columns (no output padding).
    """
    hidden, state_size = params["w1"].shape
    action_size = params["w3"].shape[0]
    hid_p = _round_up(hidden, LANE)        # 32 -> 128

    w1 = jnp.zeros((state_size, hid_p), jnp.float32).at[:, :hidden].set(params["w1"].T)
    w2 = jnp.zeros((hid_p, hid_p), jnp.float32).at[:hidden, :hidden].set(params["w2"].T)
    w3 = jnp.zeros((hid_p, action_size), jnp.float32).at[:hidden, :].set(params["w3"].T)
    b1 = jnp.zeros((1, hid_p), jnp.float32).at[:, :hidden].set(params["b1"].reshape(1, -1))
    b2 = jnp.zeros((1, hid_p), jnp.float32).at[:, :hidden].set(params["b2"].reshape(1, -1))
    b3 = params["b3"].reshape(1, -1).astype(jnp.float32)
    a1 = params["a1"].reshape(1, 1).astype(jnp.float32)
    a2 = params["a2"].reshape(1, 1).astype(jnp.float32)
    # TODO(synk): optionally store w1/w2/w3 (and accept state) in bfloat16 on
    # v6e/v7x to halve weight/x footprint; kept f32 here for exact parity.
    return {
        "w1": w1, "b1": b1, "a1": a1,
        "w2": w2, "b2": b2, "a2": a2,
        "w3": w3, "b3": b3,
        "state_size": state_size, "hidden": hidden,
        "action_size": action_size, "hid_p": hid_p,
    }


def qnetwork_forward(state, prep, *, batch_tile=8192):
    """state: (B, state_size) float32. prep: output of prepare_params()."""
    B, state_size = state.shape
    assert state_size == prep["state_size"]
    hid_p = prep["hid_p"]
    action_size = prep["action_size"]

    # Sublane-aligned fat tiles; aim for >= 2 grid steps whenever B allows so
    # the "parallel" batch axis shards across both TensorCores on v7x.
    tb = min(batch_tile, _round_up(pl.cdiv(B, 2), SUBLANE))
    grid = (pl.cdiv(B, tb),)

    x_spec = pl.BlockSpec((tb, state_size), lambda i: (i, 0))
    out_spec = pl.BlockSpec((tb, action_size), lambda i: (i, 0))

    def const_spec(shape):
        # Same block every grid step -> stays VMEM-resident, no re-fetch.
        return pl.BlockSpec(shape, lambda i: (0, 0))

    smem_scalar = pl.BlockSpec((1, 1), lambda i: (0, 0),
                               memory_space=pltpu.MemorySpace.SMEM)

    return pl.pallas_call(
        qnetwork_kernel,
        out_shape=jax.ShapeDtypeStruct((B, action_size), jnp.float32),
        grid=grid,
        in_specs=[
            x_spec,
            const_spec((state_size, hid_p)),   # w1
            const_spec((1, hid_p)),            # b1
            smem_scalar,                       # a1
            const_spec((hid_p, hid_p)),        # w2
            const_spec((1, hid_p)),            # b2
            smem_scalar,                       # a2
            const_spec((hid_p, action_size)),  # w3  (no output padding)
            const_spec((1, action_size)),      # b3
        ],
        out_specs=out_spec,
        compiler_params=pltpu.CompilerParams(
            dimension_semantics=("parallel",),
            vmem_limit_bytes=32 * 1024 * 1024,   # fine for tb <= 8192 on all gens
        ),
    )(state, prep["w1"], prep["b1"], prep["a1"],
      prep["w2"], prep["b2"], prep["a2"], prep["w3"], prep["b3"])


def init_params(key, state_size, action_size, hidden=32):
    """Deterministic synthetic init mirroring nn.Linear / nn.PReLU shapes."""
    ks = jax.random.split(key, 6)

    def linear(kw, kb, fan_in, fan_out):
        bound = 1.0 / jnp.sqrt(jnp.float32(fan_in))
        w = jax.random.uniform(kw, (fan_out, fan_in), jnp.float32, -bound, bound)
        b = jax.random.uniform(kb, (fan_out,), jnp.float32, -bound, bound)
        return w, b

    w1, b1 = linear(ks[0], ks[1], state_size, hidden)
    w2, b2 = linear(ks[2], ks[3], hidden, hidden)
    w3, b3 = linear(ks[4], ks[5], hidden, action_size)
    return {
        "w1": w1, "b1": b1, "a1": jnp.full((1,), 0.25, jnp.float32),
        "w2": w2, "b2": b2, "a2": jnp.full((1,), 0.25, jnp.float32),
        "w3": w3, "b3": b3,
    }


def qnetwork_reference(state, p):
    def prelu(x, a):
        return jnp.maximum(x, 0.0) + a * jnp.minimum(x, 0.0)
    x = state @ p["w1"].T + p["b1"]
    x = prelu(x, p["a1"][0])
    x = x @ p["w2"].T + p["b2"]
    x = prelu(x, p["a2"][0])
    return x @ p["w3"].T + p["b3"]


if __name__ == "__main__":
    key = jax.random.PRNGKey(0)
    k_state, k_state2, k_params = jax.random.split(key, 3)

    state_size, action_size = 8, 4
    params = init_params(k_params, state_size, action_size)
    prep = prepare_params(params)   # one-time repack, reused across calls

    # Small batch: single grid step.
    state = jax.random.normal(k_state, (8, state_size), jnp.float32)
    out = jax.block_until_ready(qnetwork_forward(state, prep))
    ref = qnetwork_reference(state, params)
    assert out.shape == (8, action_size)
    assert jnp.allclose(out, ref, atol=1e-4, rtol=1e-4)

    # Batch not a multiple of the tile: 2 grid steps with a partial last tile
    # (exercises masked output writes on the ragged edge).
    state2 = jax.random.normal(k_state2, (20, state_size), jnp.float32)
    out2 = jax.block_until_ready(qnetwork_forward(state2, prep))
    ref2 = qnetwork_reference(state2, params)
    assert out2.shape == (20, action_size)
    assert jnp.allclose(out2, ref2, atol=1e-4, rtol=1e-4)

    print("KERNEL_OK")
</pallas_src>

<mosaic_0001>
module attributes {stable_mosaic.version = 11 : i64} {
  func.func @qnetwork_kernel(%arg0: i32, %arg1: memref<8x8xf32, #tpu.memory_space<vmem>>, %arg2: memref<8x128xf32, #tpu.memory_space<vmem>>, %arg3: memref<1x128xf32, #tpu.memory_space<vmem>>, %arg4: memref<1x1xf32, #tpu.memory_space<smem>>, %arg5: memref<128x128xf32, #tpu.memory_space<vmem>>, %arg6: memref<1x128xf32, #tpu.memory_space<vmem>>, %arg7: memref<1x1xf32, #tpu.memory_space<smem>>, %arg8: memref<128x4xf32, #tpu.memory_space<vmem>>, %arg9: memref<1x4xf32, #tpu.memory_space<vmem>>, %arg10: memref<8x4xf32, #tpu.memory_space<vmem>>) attributes {dimension_semantics = [#tpu.dimension_semantics<parallel>], iteration_bounds = array<i64: 1>, scalar_prefetch = 0 : i64, scratch_operands = 0 : i64, tpu.core_type = #tpu.core_type<tc>, window_params = [{transform_indices = @transform_0, window_bounds = array<i64: 8, 8>}, {pipeline_mode = #tpu.pipeline_mode<synchronous>, transform_indices = @transform_1, window_bounds = array<i64: 8, 128>}, {pipeline_mode = #tpu.pipeline_mode<synchronous>, transform_indices = @transform_2, window_bounds = array<i64: 1, 128>}, {transform_indices = @transform_3, window_bounds = array<i64: 1, 1>}, {pipeline_mode = #tpu.pipeline_mode<synchronous>, transform_indices = @transform_4, window_bounds = array<i64: 128, 128>}, {pipeline_mode = #tpu.pipeline_mode<synchronous>, transform_indices = @transform_5, window_bounds = array<i64: 1, 128>}, {transform_indices = @transform_6, window_bounds = array<i64: 1, 1>}, {pipeline_mode = #tpu.pipeline_mode<synchronous>, transform_indices = @transform_7, window_bounds = array<i64: 128, 4>}, {pipeline_mode = #tpu.pipeline_mode<synchronous>, transform_indices = @transform_8, window_bounds = array<i64: 1, 4>}, {transform_indices = @transform_9, window_bounds = array<i64: 8, 4>}]} {
    %c0 = arith.constant 0 : index
    %c0_0 = arith.constant 0 : index
    %0 = vector.load %arg1[%c0, %c0_0] : memref<8x8xf32, #tpu.memory_space<vmem>>, vector<8x8xf32>
    %c0_1 = arith.constant 0 : index
    %c0_2 = arith.constant 0 : index
    %1 = memref.load %arg4[%c0_1, %c0_2] : memref<1x1xf32, #tpu.memory_space<smem>>
    %c0_3 = arith.constant 0 : index
    %c0_4 = arith.constant 0 : index
    %2 = memref.load %arg7[%c0_3, %c0_4] : memref<1x1xf32, #tpu.memory_space<smem>>
    %c0_5 = arith.constant 0 : index
    %c0_6 = arith.constant 0 : index
    %3 = vector.load %arg2[%c0_5, %c0_6] : memref<8x128xf32, #tpu.memory_space<vmem>>, vector<8x128xf32>
    %cst = arith.constant dense<0.000000e+00> : vector<8x128xf32>
    %4 = tpu.matmul %0, %3, %cst {dimension_numbers = #tpu.dot_dimension_numbers<[1], [0], [0], [1], [0, 0, 1, 1], [], []>} : vector<8x8xf32>, vector<8x128xf32>, vector<8x128xf32> -> vector<8x128xf32>
    %c0_7 = arith.constant 0 : index
    %c0_8 = arith.constant 0 : index
    %5 = vector.load %arg3[%c0_7, %c0_8] : memref<1x128xf32, #tpu.memory_space<vmem>>, vector<1x128xf32>
    %6 = vector.broadcast %5 : vector<1x128xf32> to vector<8x128xf32>
    %7 = arith.addf %4, %6 : vector<8x128xf32>
    %cst_9 = arith.constant 0.000000e+00 : f32
    %8 = vector.broadcast %cst_9 : f32 to vector<8x128xf32>
    %9 = arith.cmpf ogt, %7, %8 : vector<8x128xf32>
    %10 = vector.broadcast %1 : f32 to vector<8x128xf32>
    %11 = arith.mulf %10, %7 : vector<8x128xf32>
    %12 = arith.select %9, %7, %11 : vector<8x128xi1>, vector<8x128xf32>
    %c0_10 = arith.constant 0 : index
    %c0_11 = arith.constant 0 : index
    %13 = vector.load %arg5[%c0_10, %c0_11] : memref<128x128xf32, #tpu.memory_space<vmem>>, vector<128x128xf32>
    %cst_12 = arith.constant dense<0.000000e+00> : vector<8x128xf32>
    %14 = tpu.matmul %12, %13, %cst_12 {dimension_numbers = #tpu.dot_dimension_numbers<[1], [0], [0], [1], [0, 0, 1, 1], [], []>} : vector<8x128xf32>, vector<128x128xf32>, vector<8x128xf32> -> vector<8x128xf32>
    %c0_13 = arith.constant 0 : index
    %c0_14 = arith.constant 0 : index
    %15 = vector.load %arg6[%c0_13, %c0_14] : memref<1x128xf32, #tpu.memory_space<vmem>>, vector<1x128xf32>
    %16 = vector.broadcast %15 : vector<1x128xf32> to vector<8x128xf32>
    %17 = arith.addf %14, %16 : vector<8x128xf32>
    %cst_15 = arith.constant 0.000000e+00 : f32
    %18 = vector.broadcast %cst_15 : f32 to vector<8x128xf32>
    %19 = arith.cmpf ogt, %17, %18 : vector<8x128xf32>
    %20 = vector.broadcast %2 : f32 to vector<8x128xf32>
    %21 = arith.mulf %20, %17 : vector<8x128xf32>
    %22 = arith.select %19, %17, %21 : vector<8x128xi1>, vector<8x128xf32>
    %c0_16 = arith.constant 0 : index
    %c0_17 = arith.constant 0 : index
    %23 = vector.load %arg8[%c0_16, %c0_17] : memref<128x4xf32, #tpu.memory_space<vmem>>, vector<128x4xf32>
    %cst_18 = arith.constant dense<0.000000e+00> : vector<8x4xf32>
    %24 = tpu.matmul %22, %23, %cst_18 {dimension_numbers = #tpu.dot_dimension_numbers<[1], [0], [0], [1], [0, 0, 1, 1], [], []>} : vector<8x128xf32>, vector<128x4xf32>, vector<8x4xf32> -> vector<8x4xf32>
    %c0_19 = arith.constant 0 : index
    %c0_20 = arith.constant 0 : index
    %25 = vector.load %arg9[%c0_19, %c0_20] : memref<1x4xf32, #tpu.memory_space<vmem>>, vector<1x4xf32>
    %26 = vector.broadcast %25 : vector<1x4xf32> to vector<8x4xf32>
    %27 = arith.addf %24, %26 : vector<8x4xf32>
    %c0_21 = arith.constant 0 : index
    %c0_22 = arith.constant 0 : index
    %28 = vector.load %arg10[%c0_21, %c0_22] : memref<8x4xf32, #tpu.memory_space<vmem>>, vector<8x4xf32>
    tpu.vector_store %arg10[%c0_21, %c0_22], %27 {strides = array<i32>} : memref<8x4xf32, #tpu.memory_space<vmem>>, vector<8x4xf32>,
    return
  }
  func.func @transform_0(%arg0: i32) -> (i32, i32) {
    %c0_i32 = arith.constant 0 : i32
    %c0_i32_0 = arith.constant 0 : i32
    return %arg0, %c0_i32 : i32, i32
  }
  func.func @transform_1(%arg0: i32) -> (i32, i32) {
    %c0_i32 = arith.constant 0 : i32
    %c0_i32_0 = arith.constant 0 : i32
    %c0_i32_1 = arith.constant 0 : i32
    return %c0_i32, %c0_i32_0 : i32, i32
  }
  func.func @transform_2(%arg0: i32) -> (i32, i32) {
    %c0_i32 = arith.constant 0 : i32
    %c0_i32_0 = arith.constant 0 : i32
    %c0_i32_1 = arith.constant 0 : i32
    return %c0_i32, %c0_i32_0 : i32, i32
  }
  func.func @transform_3(%arg0: i32) -> (i32, i32) {
    %c0_i32 = arith.constant 0 : i32
    %c0_i32_0 = arith.constant 0 : i32
    %c0_i32_1 = arith.constant 0 : i32
    return %c0_i32, %c0_i32_0 : i32, i32
  }
  func.func @transform_4(%arg0: i32) -> (i32, i32) {
    %c0_i32 = arith.constant 0 : i32
    %c0_i32_0 = arith.constant 0 : i32
    %c0_i32_1 = arith.constant 0 : i32
    return %c0_i32, %c0_i32_0 : i32, i32
  }
  func.func @transform_5(%arg0: i32) -> (i32, i32) {
    %c0_i32 = arith.constant 0 : i32
    %c0_i32_0 = arith.constant 0 : i32
    %c0_i32_1 = arith.constant 0 : i32
    return %c0_i32, %c0_i32_0 : i32, i32
  }
  func.func @transform_6(%arg0: i32) -> (i32, i32) {
    %c0_i32 = arith.constant 0 : i32
    %c0_i32_0 = arith.constant 0 : i32
    %c0_i32_1 = arith.constant 0 : i32
    return %c0_i32, %c0_i32_0 : i32, i32
  }
  func.func @transform_7(%arg0: i32) -> (i32, i32) {
    %c0_i32 = arith.constant 0 : i32
    %c0_i32_0 = arith.constant 0 : i32
    %c0_i32_1 = arith.constant 0 : i32
    return %c0_i32, %c0_i32_0 : i32, i32
  }
  func.func @transform_8(%arg0: i32) -> (i32, i32) {
    %c0_i32 = arith.constant 0 : i32
    %c0_i32_0 = arith.constant 0 : i32
    %c0_i32_1 = arith.constant 0 : i32
    return %c0_i32, %c0_i32_0 : i32, i32
  }
  func.func @transform_9(%arg0: i32) -> (i32, i32) {
    %c0_i32 = arith.constant 0 : i32
    %c0_i32_0 = arith.constant 0 : i32
    return %arg0, %c0_i32 : i32, i32
  }
}

</mosaic_0001>

<bundles_post_ra>
// kernel: tpu_custom_call.1
= control target key start
LH: loop header
LB: loop body
LE: loop exit
PB: predicated region body
PF: predicated region fallthrough
CT: control target
= control target key end

     0   :  { %16 = vsyncpa [#allocation5], 0  ;;  %s472_s30 = smov [#allocation4]   ;;  %s684_s0 = inlined_call_operand.vmem [shape: f32[8,8], index: 0, kind: input, shape index: {}]   ;;  %s685_s1 = inlined_call_operand.hbm [shape: f32[8,128], index: 1, kind: input, shape index: {}]   ;;  %s686_s2 = inlined_call_operand.vmem [shape: f32[1,128], index: 2, kind: input, shape index: {}]   ;;  %s687_s3 = inlined_call_operand.<no memory space> [shape: f32[1,1], index: 3, kind: input, shape index: {}]   ;;  %s688_s4 = inlined_call_operand.vmem [shape: f32[128,128], index: 4, kind: input, shape index: {}]   ;;  %s689_s5 = inlined_call_operand.vmem [shape: f32[1,128], index: 5, kind: input, shape index: {}]   ;;  %s690_s6 = inlined_call_operand.<no memory space> [shape: f32[1,1], index: 6, kind: input, shape index: {}]   ;;  %s691_s7 = inlined_call_operand.vmem [shape: f32[128,4], index: 7, kind: input, shape index: {}]   ;;  %s692_s8 = inlined_call_operand.vmem [shape: f32[1,4], index: 8, kind: input, shape index: {}]   ;;  %s693_s9 = inlined_call_operand.vmem [shape: f32[8,4], index: 9, kind: output, shape index: {}]  }
   0x1   :  { %s25_s10 = sshll.u32 %s472_s30, 4  ;;  %s26_s10 = int_to_ptr.vmem [resolvable:$true] %s25_s10 }
   0x2   :  { %s458_s11 = scalar_lea.vmem %s26_s10, 128  ;;  %p463_p1 = scmp.lt.s32.totalorder %s26_s10, %s26_s10 }
   0x3   :  { %p459_p0 = scmp.ne.s32.totalorder %s26_s10, %s458_s11  ;;  %p464_p2 = scmp.lt.s32.totalorder %s458_s11, %s458_s11 }
   0x5   :  { %p465_p3 = por %p464_p2, %p463_p1 }
   0x7   :  { %p466_p4 = pnand %p465_p3, %p459_p0 }
   0x9   :  { %469 = shalt.err (!%p466_p4)
}
   0xa   :  { %28 = dma.hbm_to_vmem [thread:$0]  %s685_s1, 128, %s26_s10, [#allocation5]  }
   0xb   :  { %470 = dma.done.wait [#allocation5], 128  }
   0xc   :  { %471 = vsyncadd [#allocation5], 4294967168  ;;  %v473_v0 = vmov 0.0   ;;  %vm474_vm0 = vmmov 0   ;;  %vm57_vm1 = vcmask 64512   ;;  %v49_v1 = vld [vmem:[#allocation4] sm:$0xff]  ;;  %v132_v34 = vstv %s687_s3 }
   0xd   :  { %372 = vmatprep.subr.mxu0 %v473_v0  ;;  %374 = vmatprep.mubr.msk.f32.mxu0 %vm474_vm0, %v473_v0  ;;  %v46_v2 = vld [vmem:[%s684_s0] sm:$0xff]  ;;  %v150_v3 = vld [vmem:[%s688_s4 + $0x78] sm:$0xff]  ;;  %v149_v4 = vld [vmem:[%s688_s4 + $0x70] sm:$0xff]  ;;  %v229_v44 = vstv %s690_s6  ;;  %vm325_vm4 = vcmask 31744  }
   0xe   :  { %377 = vmatprep.subr.mxu1 %v473_v0  ;;  %409 = vmatprep.mubr.msk.f32.mxu1 %vm474_vm0, %v473_v0  ;;  %v148_v5 = vld [vmem:[%s688_s4 + $0x68] sm:$0xff]  ;;  %v147_v6 = vld [vmem:[%s688_s4 + $0x60] sm:$0xff]  ;;  %v146_v7 = vld [vmem:[%s688_s4 + $0x58] sm:$0xff] }
   0xf   :  { %373 = vmatpush3.msra.mxu0 %v49_v1  ;;  %378 = vmatpush3.msra.mxu1 %v150_v3  ;;  %v145_v8 = vld [vmem:[%s688_s4 + $0x50] sm:$0xff]  ;;  %v144_v9 = vld [vmem:[%s688_s4 + $0x48] sm:$0xff]  ;;  %v143_v10 = vld [vmem:[%s688_s4 + $0x40] sm:$0xff] }
  0x10   :  { %375 = vmatmul.mubr.msk.f32.vlgmr.msra.gmra.mxu0 %vm57_vm1, %v46_v2  ;;  %379 = vmatprep.subr.mxu1 %v473_v0  ;;  %v142_v11 = vld [vmem:[%s688_s4 + $0x38] sm:$0xff]  ;;  %v141_v12 = vld [vmem:[%s688_s4 + $0x30] sm:$0xff]  ;;  %v140_v13 = vld [vmem:[%s688_s4 + $0x28] sm:$0xff] }
  0x11   :  { %380 = vmatpush3.msra.mxu1 %v149_v4  ;;  %412 = vmatprep.subr.mxu0 %v473_v0  ;;  %v139_v14 = vld [vmem:[%s688_s4 + $0x20] sm:$0xff]  ;;  %v138_v15 = vld [vmem:[%s688_s4 + $0x18] sm:$0xff]  ;;  %v137_v16 = vld [vmem:[%s688_s4 + $0x10] sm:$0xff] }
  0x12   :  { %381 = vmatprep.subr.mxu1 %v473_v0  ;;  %444 = vmatprep.mubr.msk.f32.mxu0 %vm474_vm0, %v473_v0  ;;  %v136_v17 = vld [vmem:[%s688_s4 + $0x8] sm:$0xff]  ;;  %v135_v18 = vld [vmem:[%s688_s4] sm:$0xff]  ;;  %v247_v19 = vld [vmem:[%s691_s7 + $0x78] sm:$0xff] }
  0x13   :  { %382 = vmatpush3.msra.mxu1 %v148_v5  ;;  %v246_v20 = vld [vmem:[%s691_s7 + $0x70] sm:$0xff]  ;;  %413 = vmatpush3.msra.mxu0 %v247_v19  ;;  %v245_v21 = vld [vmem:[%s691_s7 + $0x68] sm:$0xff]  ;;  %v244_v22 = vld [vmem:[%s691_s7 + $0x60] sm:$0xff] }
  0x14   :  { %383 = vmatprep.subr.mxu1 %v473_v0  ;;  %414 = vmatprep.subr.mxu0 %v473_v0  ;;  %v243_v23 = vld [vmem:[%s691_s7 + $0x58] sm:$0xff]  ;;  %v242_v24 = vld [vmem:[%s691_s7 + $0x50] sm:$0xff]  ;;  %v241_v25 = vld [vmem:[%s691_s7 + $0x48] sm:$0xff] }
  0x15   :  { %384 = vmatpush3.msra.mxu1 %v147_v6  ;;  %415 = vmatpush3.msra.mxu0 %v246_v20  ;;  %v240_v26 = vld [vmem:[%s691_s7 + $0x40] sm:$0xff]  ;;  %v239_v27 = vld [vmem:[%s691_s7 + $0x38] sm:$0xff]  ;;  %v238_v28 = vld [vmem:[%s691_s7 + $0x30] sm:$0xff] }
  0x16   :  { %385 = vmatprep.subr.mxu1 %v473_v0  ;;  %416 = vmatprep.subr.mxu0 %v473_v0  ;;  %v237_v29 = vld [vmem:[%s691_s7 + $0x28] sm:$0xff]  ;;  %v236_v30 = vld [vmem:[%s691_s7 + $0x20] sm:$0xff]  ;;  %v235_v31 = vld [vmem:[%s691_s7 + $0x18] sm:$0xff] }
  0x17   :  { %386 = vmatpush3.msra.mxu1 %v146_v7  ;;  %417 = vmatpush3.msra.mxu0 %v245_v21  ;;  %v332_v32 = vld [vmem:[%s686_s2] ss:$0 sm:$0xff]  ;;  %v234_v39 = vld [vmem:[%s691_s7 + $0x10] sm:$0xff]  ;;  %v233_v40 = vld [vmem:[%s691_s7 + $0x8] sm:$0xff] }
  0x18   :  { %387 = vmatprep.subr.mxu1 %v473_v0  ;;  %418 = vmatprep.subr.mxu0 %v473_v0  ;;  %v232_v41 = vld [vmem:[%s691_s7] sm:$0xff] }
  0x19   :  { %388 = vmatpush3.msra.mxu1 %v145_v8  ;;  %419 = vmatpush3.msra.mxu0 %v244_v22  ;;  %v334_v42 = vld [vmem:[%s689_s5] ss:$0 sm:$0xff] }
  0x1a   :  { %389 = vmatprep.subr.mxu1 %v473_v0  ;;  %420 = vmatprep.subr.mxu0 %v473_v0  ;;  %v335_v49 = vld [vmem:[%s692_s8] ss:$0 sm:$0xff] }
  0x1b   :  { %390 = vmatpush3.msra.mxu1 %v144_v9  ;;  %421 = vmatpush3.msra.mxu0 %v243_v23 }
  0x1c   :  { %391 = vmatprep.subr.mxu1 %v473_v0  ;;  %422 = vmatprep.subr.mxu0 %v473_v0 }
  0x1d   :  { %392 = vmatpush3.msra.mxu1 %v143_v10  ;;  %423 = vmatpush3.msra.mxu0 %v242_v24 }
  0x1e   :  { %393 = vmatprep.subr.mxu1 %v473_v0  ;;  %424 = vmatprep.subr.mxu0 %v473_v0 }
  0x1f   :  { %394 = vmatpush3.msra.mxu1 %v142_v11  ;;  %425 = vmatpush3.msra.mxu0 %v241_v25 }
  0x20   :  { %395 = vmatprep.subr.mxu1 %v473_v0  ;;  %426 = vmatprep.subr.mxu0 %v473_v0 }
  0x21   :  { %396 = vmatpush3.msra.mxu1 %v141_v12  ;;  %427 = vmatpush3.msra.mxu0 %v240_v26 }
  0x22   :  { %397 = vmatprep.subr.mxu1 %v473_v0  ;;  %428 = vmatprep.subr.mxu0 %v473_v0 }
  0x23   :  { %398 = vmatpush3.msra.mxu1 %v140_v13  ;;  %429 = vmatpush3.msra.mxu0 %v239_v27 }
  0x24   :  { %399 = vmatprep.subr.mxu1 %v473_v0  ;;  %430 = vmatprep.subr.mxu0 %v473_v0 }
  0x25   :  { %400 = vmatpush3.msra.mxu1 %v139_v14  ;;  %431 = vmatpush3.msra.mxu0 %v238_v28 }
  0x26   :  { %401 = vmatprep.subr.mxu1 %v473_v0  ;;  %432 = vmatprep.subr.mxu0 %v473_v0 }
  0x27   :  { %402 = vmatpush3.msra.mxu1 %v138_v15  ;;  %433 = vmatpush3.msra.mxu0 %v237_v29 }
  0x28   :  { %403 = vmatprep.subr.mxu1 %v473_v0  ;;  %434 = vmatprep.subr.mxu0 %v473_v0 }
  0x29   :  { %404 = vmatpush3.msra.mxu1 %v137_v16  ;;  %435 = vmatpush3.msra.mxu0 %v236_v30 }
  0x2a   :  { %405 = vmatprep.subr.mxu1 %v473_v0  ;;  %436 = vmatprep.subr.mxu0 %v473_v0 }
  0x2b   :  { %406 = vmatpush3.msra.mxu1 %v136_v17  ;;  %437 = vmatpush3.msra.mxu0 %v235_v31 }
  0x2c   :  { %407 = vmatprep.subr.mxu1 %v473_v0  ;;  %438 = vmatprep.subr.mxu0 %v473_v0 }
  0x2d   :  { %408 = vmatpush3.msra.mxu1 %v135_v18  ;;  %439 = vmatpush3.msra.mxu0 %v234_v39 }
  0x2e   :  { %440 = vmatprep.subr.mxu0 %v473_v0 }
  0x2f   :  { %441 = vmatpush3.msra.mxu0 %v233_v40 }
  0x30   :  { %442 = vmatprep.subr.mxu0 %v473_v0 }
  0x31   :  { %443 = vmatpush3.msra.mxu0 %v232_v41 }
  0xd0   :  { %v127_v33 = vpop.f32.mrf.mxu0 }
  0xd1   :  { %v128_v35 = vadd.f32 %v332_v32, %v127_v33 }
  0xd2   :  { %v376_v36 = vpop.f32.mrf.mxu0 }
  0xd3   :  { %v133_v37 = vmul.f32 %v132_v34, %v128_v35  ;;  %vm131_vm2 = vcmp.gt.f32.partialorder %v128_v35, 0.0 }
  0xd5   :  { %v134_v38 = vsel %vm131_vm2, %v128_v35, %v133_v37 }
  0xd6   :  { %410 = vmatmul.mubr.f32.vlgmr.msra.gmra.mxu1 %v134_v38 }
 0x196   :  { %v224_v43 = vpop.f32.mrf.mxu1 }
 0x197   :  { %v225_v45 = vadd.f32 %v334_v42, %v224_v43 }
 0x198   :  { %v411_v46 = vpop.f32.mrf.mxu1 }
 0x199   :  { %vm228_vm3 = vcmp.gt.f32.partialorder %v225_v45, 0.0  ;;  %v230_v47 = vmul.f32 %v229_v44, %v225_v45 }
 0x19b   :  { %v231_v48 = vsel %vm228_vm3, %v225_v45, %v230_v47 }
 0x19c   :  { %445 = vmatmul.mubr.f32.vlgmr.msra.gmra.mxu0 %v231_v48 }
 0x25c   :  { %v321_v50 = vpop.f32.mrf.mxu0 }
 0x25d   :  { %v322_v51 = vadd.f32 %v335_v49, %v321_v50 }
 0x25e   :  { %v446_v52 = vpop.f32.mrf.mxu0 }
 0x25f   :  { %326 = vst.msk [vmem:[%s693_s9] sm:$0xff] %vm325_vm4, %v322_v51 }
 0x260   :  { %331 = vsyncpa [#allocation5], 1 }

</bundles_post_ra>
